<compile_context>
chip_gen: v7x
topology: tpu7x:2x2x1
jax: 0.10.0
libtpu: 0.0.40
codegen_flags: <defaults>
</compile_context>

<pallas_src>
import functools

import jax
import jax.numpy as jnp
from jax import lax
from jax.experimental import pallas as pl
from jax.experimental.pallas import tpu as pltpu


def _round_up(x: int, m: int) -> int:
    return (x + m - 1) // m * m


def _ffn_kernel(x_ref, w1_ref, b1_ref, w2_ref, b2_ref, o_ref, acc_ref):
    """One (row-tile, d_ff-tile) grid step.

    grid = (rows, d_ff tiles). The d_ff axis is the contraction axis of the
    second matmul; partial products are accumulated in a resident f32 VMEM
    scratch and written back on the last d_ff step (standard P3 pattern).
    """
    j = pl.program_id(1)

    @pl.when(j == 0)
    def _init():
        acc_ref[...] = jnp.zeros_like(acc_ref)

    # First linear: (tm, d_model) @ (d_model, tf), bf16 operands, f32 acc.
    h = jnp.dot(x_ref[...].astype(jnp.bfloat16), w1_ref[...],
                preferred_element_type=jnp.float32)
    h = h + b1_ref[...]  # f32 bias add

    # Exact (erf) GELU in f32 — matches torch.nn.GELU() default.
    # (tanh-approx would move onto the EUP slot; kept exact for parity.)
    h = 0.5 * h * (1.0 + lax.erf(h * jnp.float32(0.7071067811865476)))

    # Dropout: identity in eval mode.
    # TODO(synk): training-mode dropout (pltpu.prng_random_bits mask) not emitted.

    # Second linear, partial over this d_ff tile: (tm, tf) @ (tf, d_model).
    acc_ref[...] += jnp.dot(h.astype(jnp.bfloat16), w2_ref[...],
                            preferred_element_type=jnp.float32)

    @pl.when(j == pl.num_programs(1) - 1)
    def _finalize():
        o_ref[...] = (acc_ref[...] + b2_ref[...]).astype(o_ref.dtype)


@functools.partial(jax.jit, static_argnames=("tm", "tf"))
def positionwise_feed_forward(x, w1, b1, w2, b2, *, tm=256, tf=None):
    """x: [B, S, d_model]; w1: [d_model, d_ff]; w2: [d_ff, d_model].

    tm: row tile (rows = B*S flattened).  tf: d_ff tile (None => whole d_ff,
    weights fully resident; otherwise must be a multiple of 128 dividing d_ff).
    """
    B, S, d_model = x.shape
    d_ff = w1.shape[1]
    M = B * S

    # Row tile: biggest requested size that is a multiple of 8, no larger than
    # the (padded) row count.  Pad rows with zeros so tm_eff divides M_pad.
    tm_eff = _round_up(min(tm, _round_up(M, 8)), 8)
    M_pad = _round_up(M, tm_eff)

    if tf is None:
        tf_eff = d_ff  # weights resident: constant index_map => DMA'd once
    else:
        tf_eff = int(tf)
        assert d_ff % tf_eff == 0, "tf must divide d_ff"
        assert tf_eff == d_ff or tf_eff % 128 == 0, \
            "tf must be a multiple of 128 (lane tiling) or equal d_ff"

    x2d = x.reshape(M, d_model)
    if M_pad != M:
        x2d = jnp.pad(x2d, ((0, M_pad - M), (0, 0)))

    # Weights in bf16 (MXU-native, halves weight VMEM/HBM traffic); biases f32.
    w1b = w1.astype(jnp.bfloat16)
    w2b = w2.astype(jnp.bfloat16)
    b1_2d = b1.astype(jnp.float32).reshape(1, d_ff)
    b2_2d = b2.astype(jnp.float32).reshape(1, d_model)

    itemsize_x = jnp.dtype(x.dtype).itemsize
    wbytes = 2  # bf16

    # VMEM budget: double-buffered tiles + f32 accumulator + headroom.
    vmem_need = (
        2 * tm_eff * d_model * itemsize_x            # x tiles
        + 2 * tm_eff * d_model * itemsize_x          # out tiles
        + 2 * 2 * d_model * tf_eff * wbytes          # w1 + w2 tiles
        + 2 * (tf_eff + d_model) * 4                 # bias tiles
        + tm_eff * d_model * 4                       # acc scratch
        + tm_eff * tf_eff * 4                        # live h intermediate
    )
    vmem_limit = int(min(100 * 1024 * 1024,
                         max(32 * 1024 * 1024, 2 * vmem_need)))

    cost = pl.CostEstimate(
        flops=int(4 * M * d_model * d_ff),           # two matmuls
        transcendentals=int(M * d_ff),               # erf
        bytes_accessed=int(2 * M * d_model * itemsize_x
                           + 2 * d_model * d_ff * wbytes
                           + (d_ff + d_model) * 4),
    )

    out2d = pl.pallas_call(
        _ffn_kernel,
        out_shape=jax.ShapeDtypeStruct((M_pad, d_model), x.dtype),
        grid_spec=pltpu.PrefetchScalarGridSpec(
            num_scalar_prefetch=0,
            grid=(M_pad // tm_eff, d_ff // tf_eff),
            in_specs=[
                pl.BlockSpec((tm_eff, d_model), lambda i, j: (i, 0)),
                pl.BlockSpec((d_model, tf_eff), lambda i, j: (0, j)),
                pl.BlockSpec((1, tf_eff), lambda i, j: (0, j)),
                pl.BlockSpec((tf_eff, d_model), lambda i, j: (j, 0)),
                pl.BlockSpec((1, d_model), lambda i, j: (0, 0)),
            ],
            out_specs=pl.BlockSpec((tm_eff, d_model), lambda i, j: (i, 0)),
            scratch_shapes=[pltpu.VMEM((tm_eff, d_model), jnp.float32)],
        ),
        compiler_params=pltpu.CompilerParams(
            dimension_semantics=("parallel", "arbitrary"),
            vmem_limit_bytes=vmem_limit,
        ),
        cost_estimate=cost,
    )(x2d, w1b, b1_2d, w2b, b2_2d)

    return out2d[:M].reshape(B, S, d_model)


def _reference_ffn_f32(x, w1, b1, w2, b2):
    h = x @ w1 + b1
    h = jax.nn.gelu(h, approximate=False)
    return h @ w2 + b2


def _reference_ffn_bf16(x, w1, b1, w2, b2):
    # Mirrors the kernel precision: bf16 matmul operands, f32 accumulation,
    # f32 bias/GELU.
    h = jnp.dot(x.astype(jnp.bfloat16), w1.astype(jnp.bfloat16),
                preferred_element_type=jnp.float32) + b1
    h = jax.nn.gelu(h, approximate=False)
    o = jnp.dot(h.astype(jnp.bfloat16), w2.astype(jnp.bfloat16),
                preferred_element_type=jnp.float32) + b2
    return o.astype(x.dtype)


if __name__ == "__main__":
    key = jax.random.PRNGKey(0)

    configs = [
        # (B, S, d_model, d_ff, tf): resident-weight path (single d_ff tile)
        (2, 8, 32, 64, None),
        # tiled d_ff (accumulator path) + odd row count (exercises padding)
        (2, 7, 32, 256, 128),
    ]

    for (B, S, d_model, d_ff, tf) in configs:
        key, kx, kw1, kb1, kw2, kb2 = jax.random.split(key, 6)
        x = jax.random.normal(kx, (B, S, d_model), dtype=jnp.float32)

        bound1 = 1.0 / (d_model ** 0.5)
        bound2 = 1.0 / (d_ff ** 0.5)
        # Stored pre-transposed relative to torch's (out, in) layout.
        w1 = jax.random.uniform(kw1, (d_model, d_ff), jnp.float32, -bound1, bound1)
        b1 = jax.random.uniform(kb1, (d_ff,), jnp.float32, -bound1, bound1)
        w2 = jax.random.uniform(kw2, (d_ff, d_model), jnp.float32, -bound2, bound2)
        b2 = jax.random.uniform(kb2, (d_model,), jnp.float32, -bound2, bound2)

        out = positionwise_feed_forward(x, w1, b1, w2, b2, tf=tf)
        out = jax.block_until_ready(out)
        assert out.shape == (B, S, d_model)

        ref_match = _reference_ffn_bf16(x, w1, b1, w2, b2)
        assert jnp.allclose(out, ref_match, atol=5e-4, rtol=5e-4), \
            "mismatch vs precision-matched reference"

        ref_f32 = _reference_ffn_f32(x, w1, b1, w2, b2)
        assert jnp.allclose(out, ref_f32, atol=2e-2, rtol=2e-2), \
            "mismatch vs f32 reference beyond bf16 tolerance"

    print("KERNEL_OK")
</pallas_src>

<mosaic_0001>
module attributes {stable_mosaic.version = 11 : i64} {
  func.func @_ffn_kernel(%arg0: i32, %arg1: i32, %arg2: memref<16x32xf32, #tpu.memory_space<vmem>>, %arg3: memref<32x64xbf16, #tpu.memory_space<vmem>>, %arg4: memref<1x64xf32, #tpu.memory_space<vmem>>, %arg5: memref<64x32xbf16, #tpu.memory_space<vmem>>, %arg6: memref<1x32xf32, #tpu.memory_space<vmem>>, %arg7: memref<16x32xf32, #tpu.memory_space<vmem>>, %arg8: memref<16x32xf32, #tpu.memory_space<vmem>>) attributes {dimension_semantics = [#tpu.dimension_semantics<parallel>, #tpu.dimension_semantics<arbitrary>], iteration_bounds = array<i64: 1, 1>, scalar_prefetch = 0 : i64, scratch_operands = 1 : i64, tpu.core_type = #tpu.core_type<tc>, window_params = [{transform_indices = @transform_0, window_bounds = array<i64: 16, 32>}, {transform_indices = @transform_1, window_bounds = array<i64: 32, 64>}, {transform_indices = @transform_2, window_bounds = array<i64: 1, 64>}, {transform_indices = @transform_3, window_bounds = array<i64: 64, 32>}, {pipeline_mode = #tpu.pipeline_mode<synchronous>, transform_indices = @transform_4, window_bounds = array<i64: 1, 32>}, {transform_indices = @transform_5, window_bounds = array<i64: 16, 32>}]} {
    %c0_i32 = arith.constant 0 : i32
    %0 = arith.cmpi eq, %arg1, %c0_i32 : i32
    %1 = arith.extui %0 : i1 to i32
    %c0_i32_0 = arith.constant 0 : i32
    %2 = arith.cmpi ne, %1, %c0_i32_0 : i32
    scf.if %2 {
      %cst_18 = arith.constant 0.000000e+00 : f32
      %27 = vector.broadcast %cst_18 : f32 to vector<16x32xf32>
      %c0_19 = arith.constant 0 : index
      %c0_20 = arith.constant 0 : index
      %28 = vector.load %arg8[%c0_19, %c0_20] : memref<16x32xf32, #tpu.memory_space<vmem>>, vector<16x32xf32>
      tpu.vector_store %arg8[%c0_19, %c0_20], %27 {strides = array<i32>} : memref<16x32xf32, #tpu.memory_space<vmem>>, vector<16x32xf32>,
    } else {
    }
    %c0 = arith.constant 0 : index
    %c0_1 = arith.constant 0 : index
    %3 = vector.load %arg2[%c0, %c0_1] : memref<16x32xf32, #tpu.memory_space<vmem>>, vector<16x32xf32>
    %4 = arith.truncf %3 : vector<16x32xf32> to vector<16x32xbf16>
    %c0_2 = arith.constant 0 : index
    %c0_3 = arith.constant 0 : index
    %5 = vector.load %arg3[%c0_2, %c0_3] : memref<32x64xbf16, #tpu.memory_space<vmem>>, vector<32x64xbf16>
    %cst = arith.constant dense<0.000000e+00> : vector<16x64xf32>
    %6 = tpu.matmul %4, %5, %cst {dimension_numbers = #tpu.dot_dimension_numbers<[1], [0], [0], [1], [0, 0, 1, 1], [], []>} : vector<16x32xbf16>, vector<32x64xbf16>, vector<16x64xf32> -> vector<16x64xf32>
    %c0_4 = arith.constant 0 : index
    %c0_5 = arith.constant 0 : index
    %7 = vector.load %arg4[%c0_4, %c0_5] : memref<1x64xf32, #tpu.memory_space<vmem>>, vector<1x64xf32>
    %8 = vector.broadcast %7 : vector<1x64xf32> to vector<16x64xf32>
    %9 = arith.addf %6, %8 : vector<16x64xf32>
    %cst_6 = arith.constant 5.000000e-01 : f32
    %10 = vector.broadcast %cst_6 : f32 to vector<16x64xf32>
    %11 = arith.mulf %10, %9 : vector<16x64xf32>
    %cst_7 = arith.constant 0.707106769 : f32
    %12 = vector.broadcast %cst_7 : f32 to vector<16x64xf32>
    %13 = arith.mulf %9, %12 : vector<16x64xf32>
    %14 = math.erf %13 : vector<16x64xf32>
    %cst_8 = arith.constant 1.000000e+00 : f32
    %15 = vector.broadcast %cst_8 : f32 to vector<16x64xf32>
    %16 = arith.addf %15, %14 : vector<16x64xf32>
    %17 = arith.mulf %11, %16 : vector<16x64xf32>
    %c0_9 = arith.constant 0 : index
    %c0_10 = arith.constant 0 : index
    %18 = vector.load %arg8[%c0_9, %c0_10] : memref<16x32xf32, #tpu.memory_space<vmem>>, vector<16x32xf32>
    %19 = arith.truncf %17 : vector<16x64xf32> to vector<16x64xbf16>
    %c0_11 = arith.constant 0 : index
    %c0_12 = arith.constant 0 : index
    %20 = vector.load %arg5[%c0_11, %c0_12] : memref<64x32xbf16, #tpu.memory_space<vmem>>, vector<64x32xbf16>
    %cst_13 = arith.constant dense<0.000000e+00> : vector<16x32xf32>
    %21 = tpu.matmul %19, %20, %cst_13 {dimension_numbers = #tpu.dot_dimension_numbers<[1], [0], [0], [1], [0, 0, 1, 1], [], []>} : vector<16x64xbf16>, vector<64x32xbf16>, vector<16x32xf32> -> vector<16x32xf32>
    %22 = arith.addf %18, %21 : vector<16x32xf32>
    %c0_14 = arith.constant 0 : index
    %c0_15 = arith.constant 0 : index
    %23 = vector.load %arg8[%c0_14, %c0_15] : memref<16x32xf32, #tpu.memory_space<vmem>>, vector<16x32xf32>
    tpu.vector_store %arg8[%c0_14, %c0_15], %22 {strides = array<i32>} : memref<16x32xf32, #tpu.memory_space<vmem>>, vector<16x32xf32>,
    %c0_i32_16 = arith.constant 0 : i32
    %24 = arith.cmpi eq, %arg1, %c0_i32_16 : i32
    %25 = arith.extui %24 : i1 to i32
    %c0_i32_17 = arith.constant 0 : i32
    %26 = arith.cmpi ne, %25, %c0_i32_17 : i32
    scf.if %26 {
      %c0_18 = arith.constant 0 : index
      %c0_19 = arith.constant 0 : index
      %27 = vector.load %arg8[%c0_18, %c0_19] : memref<16x32xf32, #tpu.memory_space<vmem>>, vector<16x32xf32>
      %c0_20 = arith.constant 0 : index
      %c0_21 = arith.constant 0 : index
      %28 = vector.load %arg6[%c0_20, %c0_21] : memref<1x32xf32, #tpu.memory_space<vmem>>, vector<1x32xf32>
      %29 = vector.broadcast %28 : vector<1x32xf32> to vector<16x32xf32>
      %30 = arith.addf %27, %29 : vector<16x32xf32>
      %c0_22 = arith.constant 0 : index
      %c0_23 = arith.constant 0 : index
      %31 = vector.load %arg7[%c0_22, %c0_23] : memref<16x32xf32, #tpu.memory_space<vmem>>, vector<16x32xf32>
      tpu.vector_store %arg7[%c0_22, %c0_23], %30 {strides = array<i32>} : memref<16x32xf32, #tpu.memory_space<vmem>>, vector<16x32xf32>,
    } else {
    }
    return
  }
  func.func @transform_0(%arg0: i32, %arg1: i32) -> (i32, i32) {
    %c0_i32 = arith.constant 0 : i32
    %c0_i32_0 = arith.constant 0 : i32
    return %arg0, %c0_i32 : i32, i32
  }
  func.func @transform_1(%arg0: i32, %arg1: i32) -> (i32, i32) {
    %c0_i32 = arith.constant 0 : i32
    %c0_i32_0 = arith.constant 0 : i32
    return %c0_i32, %arg1 : i32, i32
  }
  func.func @transform_2(%arg0: i32, %arg1: i32) -> (i32, i32) {
    %c0_i32 = arith.constant 0 : i32
    %c0_i32_0 = arith.constant 0 : i32
    return %c0_i32, %arg1 : i32, i32
  }
  func.func @transform_3(%arg0: i32, %arg1: i32) -> (i32, i32) {
    %c0_i32 = arith.constant 0 : i32
    %c0_i32_0 = arith.constant 0 : i32
    return %arg1, %c0_i32 : i32, i32
  }
  func.func @transform_4(%arg0: i32, %arg1: i32) -> (i32, i32) {
    %c0_i32 = arith.constant 0 : i32
    %c0_i32_0 = arith.constant 0 : i32
    %c0_i32_1 = arith.constant 0 : i32
    return %c0_i32, %c0_i32_0 : i32, i32
  }
  func.func @transform_5(%arg0: i32, %arg1: i32) -> (i32, i32) {
    %c0_i32 = arith.constant 0 : i32
    %c0_i32_0 = arith.constant 0 : i32
    return %arg0, %c0_i32 : i32, i32
  }
}

</mosaic_0001>

<bundles_post_ra>
// kernel: positionwise_feed_forward.1
= control target key start
LH: loop header
LB: loop body
LE: loop exit
PB: predicated region body
PF: predicated region fallthrough
CT: control target
= control target key end

     0   :  { %v303_v1 = vmov 0.0   ;;  %vm304_vm0 = vmmov 0   ;;  %vm26_vm1 = vcmask 261120   ;;  %s387_s0 = inlined_call_operand.vmem [shape: f32[16,32], index: 0, kind: input, shape index: {}]   ;;  %s388_s1 = inlined_call_operand.vmem [shape: bf16[32,64], index: 1, kind: input, shape index: {}]   ;;  %s389_s2 = inlined_call_operand.vmem [shape: f32[1,64], index: 2, kind: input, shape index: {}]   ;;  %s390_s3 = inlined_call_operand.vmem [shape: bf16[64,32], index: 3, kind: input, shape index: {}]   ;;  %s391_s4 = inlined_call_operand.vmem [shape: f32[1,32], index: 4, kind: input, shape index: {}]   ;;  %s392_s5 = inlined_call_operand.hbm [shape: f32[16,32], index: 5, kind: output, shape index: {}]  }
   0x1   :  { %v269_v0 = vld [vmem:[%s388_s1] sm:$0xff]   ;;  %244 = vmatprep.subr.bf16.mxu0 %v303_v1  ;;  %252 = vmatprep.subr.bf16.mxu1 %v303_v1  ;;  %v270_v2 = vld [vmem:[%s388_s1 + $0x8] sm:$0xff]   ;;  %27 = vst.msk [vmem:[#allocation2] sm:$0xff] %vm26_vm1, %v303_v1  ;;  %28 = vst.msk [vmem:[#allocation2 + $0x8] sm:$0xff] %vm26_vm1, %v303_v1 }
   0x2   :  { %245 = vmatpush3.bf16.msra.mxu0 %v269_v0  ;;  %248 = vmatprep.mubr.msk.bf16.mxu0 %vm304_vm0, %v303_v1  ;;  %v29_v3 = vld [vmem:[%s387_s0] sm:$0xff]  ;;  %v30_v4 = vld [vmem:[%s387_s0 + $0x8] sm:$0xff] }
   0x3   :  { %246 = vmatprep.subr.bf16.mxu0 %v303_v1  ;;  %260 = vmatprep.mubr.msk.bf16.mxu1 %vm304_vm0, %v303_v1  ;;  %v31_v5 = vpack.c.bf16 %v30_v4, %v29_v3 }
   0x4   :  { %10 = vsyncpa [#allocation4], 0  ;;  %v271_v6 = vld [vmem:[%s390_s3] sm:$0xff]   ;;  %v272_v7 = vld [vmem:[%s390_s3 + $0x8] sm:$0xff]   ;;  %vm145_vm2 = vcmask 523264   ;;  %s305_s9 = smov [#allocation3]  }
   0x5   :  { %253 = vmatpush3.bf16.msra.mxu1 %v271_v6  ;;  %v273_v8 = vld [vmem:[%s390_s3 + $0x10] sm:$0xff]   ;;  %v274_v9 = vld [vmem:[%s390_s3 + $0x18] sm:$0xff]   ;;  %v226_v10 = vld [vmem:[%s389_s2] ss:$0 sm:$0xff]  ;;  %s215_s10 = sshll.u32 %s305_s9, 4  ;;  %s216_s10 = int_to_ptr.vmem [resolvable:$true] %s215_s10 }
   0x6   :  { %247 = vmatpush3.bf16.msra.mxu0 %v270_v2  ;;  %254 = vmatprep.subr.bf16.mxu1 %v303_v1  ;;  %v235_v36 = vld [vmem:[%s391_s4] ss:$0 sm:$0xff]  ;;  %s279_s11 = scalar_lea.vmem %s216_s10, 256  ;;  %p284_p1 = scmp.lt.s32.totalorder %s216_s10, %s216_s10 }
   0x7   :  { %p280_p0 = scmp.ne.s32.totalorder %s216_s10, %s279_s11  ;;  %p285_p2 = scmp.lt.s32.totalorder %s279_s11, %s279_s11 }
   0x8   :  { %v110_v28 = vld [vmem:[#allocation2] sm:$0xff]  ;;  %v111_v30 = vld [vmem:[#allocation2 + $0x8] sm:$0xff] }
   0x9   :  { %249 = vmatmul.mubr.msk.bf16.vlgmr.msra.gmra.mrb[0].mxu0 %vm26_vm1, %v31_v5  ;;  %255 = vmatpush3.bf16.msra.mxu1 %v272_v7  ;;  %p286_p3 = por %p285_p2, %p284_p1 }
   0xa   :  { %256 = vmatprep.subr.bf16.mxu1 %v303_v1 }
   0xb   :  { %p287_p4 = pnand %p286_p3, %p280_p0 }
   0xd   :  { %257 = vmatpush3.bf16.msra.mxu1 %v273_v8 }
   0xe   :  { %258 = vmatprep.subr.bf16.mxu1 %v303_v1 }
  0x11   :  { %259 = vmatpush3.bf16.msra.mxu1 %v274_v9 }
  0xdc   :  { %v93_v11 = vpop.f32.mrb[0].mxu0 }
  0xdd   :  { %v94_v12 = vadd.f32 %v226_v10, %v93_v11  ;;  %v250_v13 = vpop.f32.mrb[1].mxu0 }
  0xde   :  { %v96_v14 = vpop.f32.mrb[2].mxu0 }
  0xdf   :  { %v102_v15 = vmul.f32 0.70710677, %v94_v12  ;;  %v97_v16 = vadd.f32 %v226_v10, %v96_v14  ;;  %v251_v17 = vpop.f32.mrb[3].mxu0  ;;  %v100_v22 = vmul.f32 0.5, %v94_v12 }
  0xe1   :  { %275 = verf.f32 %v102_v15  ;;  %v103_v18 = vmul.f32 0.70710677, %v97_v16  ;;  %v101_v23 = vmul.f32 0.5, %v97_v16 }
  0xe3   :  { %277 = verf.f32 %v103_v18 }
  0xeb   :  { %v276_v19 = vpop.eup %275 }
  0xec   :  { %v106_v20 = vadd.f32 1.0, %v276_v19 }
  0xed   :  { %v278_v21 = vpop.eup %277 }
  0xee   :  { %v107_v24 = vadd.f32 1.0, %v278_v21  ;;  %v108_v25 = vmul.f32 %v106_v20, %v100_v22 }
  0xf0   :  { %v109_v26 = vmul.f32 %v107_v24, %v101_v23 }
  0xf2   :  { %v112_v27 = vpack.c.bf16 %v109_v26, %v108_v25 }
  0xf4   :  { %261 = vmatmul.mubr.msk.bf16.vlgmr.msra.gmra.mrb[0].mxu1 %vm145_vm2, %v112_v27 }
 0x1c7   :  { %v183_v29 = vpop.f32.mrb[0].mxu1 }
 0x1c8   :  { %v190_v31 = vadd.f32 %v183_v29, %v110_v28  ;;  %v262_v32 = vpop.f32.mrb[1].mxu1 }
 0x1c9   :  { %v186_v33 = vpop.f32.mrb[2].mxu1 }
 0x1ca   :  { %192 = vst.msk [vmem:[#allocation2] sm:$0xff] %vm26_vm1, %v190_v31  ;;  %v191_v34 = vadd.f32 %v186_v33, %v111_v30  ;;  %v263_v35 = vpop.f32.mrb[3].mxu1 }
 0x1cc   :  { %193 = vst.msk [vmem:[#allocation2 + $0x8] sm:$0xff] %vm26_vm1, %v191_v34 }
 0x1d1   :  { %v197_v37 = vld [vmem:[#allocation2] sm:$0xff] }
 0x1d2   :  { %v206_v38 = vadd.f32 %v235_v36, %v197_v37 }
 0x1d3   :  { %v198_v39 = vld [vmem:[#allocation2 + $0x8] sm:$0xff] }
 0x1d4   :  { %v207_v40 = vadd.f32 %v235_v36, %v198_v39  ;;  %208 = vst.msk [vmem:[#allocation3] sm:$0xff] %vm26_vm1, %v206_v38 }
 0x1d6   :  { %209 = vst.msk [vmem:[#allocation3 + $0x8] sm:$0xff] %vm26_vm1, %v207_v40 }
 0x1d7   :  { %290 = shalt.err (!%p287_p4)
}
 0x1d8   :  { %s291_s13 = scalar_lea.hbm %s392_s5, 256 }
 0x1d9   :  { %p292_p5 = scmp.ne.s32.totalorder %s392_s5, %s291_s13  ;;  %p295_p6 = scmp.lt.u32.totalorder %s291_s13, %s392_s5 }
 0x1db   :  { %p297_p7 = pnand %p295_p6, %p292_p5 }
 0x1dd   :  { %300 = shalt.err (!%p297_p7)
}
 0x1de   :  { %s306_s18 = smov 128   ;;  %s307_s19 = smov 8  }
 0x1df   :  { %221 = dma.vmem_to_hbm [thread:$0]  %s216_s10, 256, %s392_s5, [#allocation4], %s306_s18, %s306_s18, %s307_s19  }
 0x1e0   :  { %301 = dma.done.wait [#allocation4], 256  }
 0x1e1   :  { %302 = vsyncadd [#allocation4], 4294967040 }
 0x1e2   :  { %225 = vsyncpa [#allocation4], 1 }

</bundles_post_ra>
